<compile_context>
chip_gen: v5e
topology: v5e:2x2
jax: 0.10.0
libtpu: 0.0.40
codegen_flags: <defaults>
</compile_context>

<pallas_src>
import functools

import jax
import jax.numpy as jnp
from jax.experimental import pallas as pl
from jax.experimental.pallas import tpu as pltpu

_LANE = 128          # TPU lane width
_SUBLANE_F32 = 8     # f32 sublane packing (x is streamed as f32 now)
_TB_MAX = 1024       # batch-tile cap: 1024*3072*4B = 12 MiB/buffer (fits all gens
                     # with the explicit vmem_limit_bytes below)


def _round_up(n, m):
    return ((n + m - 1) // m) * m


def _logreg_kernel(x_ref, w_ref, b_ref, o_ref):
    # x_ref: (TB, D) f32, w_ref: (D, Cp) bf16, b_ref: (1, Cp) f32, o_ref: (TB, Cp) f32
    # Cast x on the VPU in-kernel (hidden under the x DMA); MXU accumulates f32.
    x_bf16 = x_ref[...].astype(jnp.bfloat16)
    acc = jnp.dot(x_bf16, w_ref[...], preferred_element_type=jnp.float32)
    o_ref[...] = acc + b_ref[...]


def prepare_logreg_params(weight, bias):
    """One-time parameter prep (call at init, NOT per forward).

    weight: [C, D] (PyTorch nn.Linear layout), bias: [C]
    Returns (w_dc [D, Cp] bf16, b_row [1, Cp] f32) with Cp = round_up(C, 128).
    """
    C, D = weight.shape
    Cp = _round_up(C, _LANE)
    w_dc = jnp.zeros((D, Cp), jnp.bfloat16).at[:, :C].set(
        weight.T.astype(jnp.bfloat16))
    b_row = jnp.zeros((1, Cp), jnp.float32).at[:, :C].set(
        bias.astype(jnp.float32))
    return w_dc, b_row


@functools.partial(jax.jit, static_argnums=(3,))
def logreg_forward(x, w_dc, b_row, num_classes):
    """x: [B, D] float32 (flattened image), w_dc: [D, Cp] bf16, b_row: [1, Cp] f32."""
    B, D = x.shape
    Cp = w_dc.shape[1]

    # Batch tile: multiple of 8 (f32 sublanes), capped at _TB_MAX, and sized so
    # there are >=2 tiles when B allows it (lets "parallel" shard over v7x's
    # two TensorCores).  The last block may be ragged; Pallas masks it.
    TB = min(_TB_MAX, _round_up(pl.cdiv(B, 2), _SUBLANE_F32))
    TB = max(TB, _SUBLANE_F32)
    grid = (pl.cdiv(B, TB),)

    # Explicit VMEM budget (covers v5e's 16 MiB scoped default, v6e 32/128 MiB,
    # v7x 32/64 MiB per TC): double-buffered f32 x + f32 out tiles, resident
    # (double-buffered) bf16 weight + f32 bias, plus margin for Mosaic scratch.
    vmem_bytes = (2 * TB * D * 4) + (2 * TB * Cp * 4) + (2 * D * Cp * 2) + (2 * Cp * 4)
    vmem_limit = vmem_bytes + (4 << 20)

    out = pl.pallas_call(
        _logreg_kernel,
        out_shape=jax.ShapeDtypeStruct((B, Cp), jnp.float32),
        grid=grid,
        in_specs=[
            pl.BlockSpec((TB, D), lambda i: (i, 0)),   # x tile, pipelined over B
            pl.BlockSpec((D, Cp), lambda i: (0, 0)),   # weight resident across B tiles
            pl.BlockSpec((1, Cp), lambda i: (0, 0)),   # bias resident
        ],
        out_specs=pl.BlockSpec((TB, Cp), lambda i: (i, 0)),
        compiler_params=pltpu.CompilerParams(
            dimension_semantics=("parallel",),         # megacore sharding on v7x
            vmem_limit_bytes=vmem_limit,
        ),
        cost_estimate=pl.CostEstimate(
            flops=2 * B * D * Cp,
            transcendentals=0,
            bytes_accessed=4 * B * D + 2 * D * Cp + 4 * B * Cp,
        ),
    )(x, w_dc, b_row)

    return out[:, :num_classes]


if __name__ == "__main__":
    input_size = 3 * 32 * 32   # 3072
    num_classes = 10
    batch = 2

    key = jax.random.PRNGKey(0)
    kx, kw, kb = jax.random.split(key, 3)

    # Deterministic parameter init (matches nn.Linear's default uniform range).
    bound = 1.0 / jnp.sqrt(jnp.float32(input_size))
    weight = jax.random.uniform(kw, (num_classes, input_size),
                                dtype=jnp.float32, minval=-bound, maxval=bound)
    bias = jax.random.uniform(kb, (num_classes,),
                              dtype=jnp.float32, minval=-bound, maxval=bound)

    # Input: flattened CIFAR-like images [B, 3*32*32].
    x = jax.random.normal(kx, (batch, input_size), dtype=jnp.float32)

    # One-time parameter prep (transpose + pad + bf16 cast), then forward.
    w_dc, b_row = prepare_logreg_params(weight, bias)
    out = logreg_forward(x, w_dc, b_row, num_classes)
    out = jax.block_until_ready(out)

    assert out.shape == (batch, num_classes)

    # Tight check against a reference using the same bf16 input/weight quantization.
    ref_q = (x.astype(jnp.bfloat16).astype(jnp.float32)
             @ weight.T.astype(jnp.bfloat16).astype(jnp.float32)) + bias
    assert jnp.allclose(out, ref_q, atol=1e-3, rtol=1e-3)

    # Loose check against the exact f32 forward (bf16 quantization error only).
    ref_f32 = x @ weight.T + bias
    assert jnp.allclose(out, ref_f32, atol=5e-2, rtol=5e-2)

    print("KERNEL_OK")
</pallas_src>

<mosaic_0001>
module attributes {stable_mosaic.version = 11 : i64} {
  func.func @_logreg_kernel(%arg0: i32, %arg1: memref<8x3072xf32, #tpu.memory_space<vmem>>, %arg2: memref<3072x128xbf16, #tpu.memory_space<vmem>>, %arg3: memref<1x128xf32, #tpu.memory_space<vmem>>, %arg4: memref<8x128xf32, #tpu.memory_space<vmem>>) attributes {dimension_semantics = [#tpu.dimension_semantics<parallel>], iteration_bounds = array<i64: 1>, scalar_prefetch = 0 : i64, scratch_operands = 0 : i64, tpu.core_type = #tpu.core_type<tc>, window_params = [{transform_indices = @transform_0, window_bounds = array<i64: 8, 3072>}, {pipeline_mode = #tpu.pipeline_mode<synchronous>, transform_indices = @transform_1, window_bounds = array<i64: 3072, 128>}, {pipeline_mode = #tpu.pipeline_mode<synchronous>, transform_indices = @transform_2, window_bounds = array<i64: 1, 128>}, {transform_indices = @transform_3, window_bounds = array<i64: 8, 128>}]} {
    %c0 = arith.constant 0 : index
    %c0_0 = arith.constant 0 : index
    %0 = vector.load %arg1[%c0, %c0_0] : memref<8x3072xf32, #tpu.memory_space<vmem>>, vector<8x3072xf32>
    %1 = arith.truncf %0 : vector<8x3072xf32> to vector<8x3072xbf16>
    %c0_1 = arith.constant 0 : index
    %c0_2 = arith.constant 0 : index
    %2 = vector.load %arg2[%c0_1, %c0_2] : memref<3072x128xbf16, #tpu.memory_space<vmem>>, vector<3072x128xbf16>
    %cst = arith.constant dense<0.000000e+00> : vector<8x128xf32>
    %3 = tpu.matmul %1, %2, %cst {dimension_numbers = #tpu.dot_dimension_numbers<[1], [0], [0], [1], [0, 0, 1, 1], [], []>} : vector<8x3072xbf16>, vector<3072x128xbf16>, vector<8x128xf32> -> vector<8x128xf32>
    %c0_3 = arith.constant 0 : index
    %c0_4 = arith.constant 0 : index
    %4 = vector.load %arg3[%c0_3, %c0_4] : memref<1x128xf32, #tpu.memory_space<vmem>>, vector<1x128xf32>
    %5 = vector.broadcast %4 : vector<1x128xf32> to vector<8x128xf32>
    %6 = arith.addf %3, %5 : vector<8x128xf32>
    %c0_5 = arith.constant 0 : index
    %c0_6 = arith.constant 0 : index
    %7 = vector.load %arg4[%c0_5, %c0_6] : memref<8x128xf32, #tpu.memory_space<vmem>>, vector<8x128xf32>
    tpu.vector_store %arg4[%c0_5, %c0_6], %6 {strides = array<i32>} : memref<8x128xf32, #tpu.memory_space<vmem>>, vector<8x128xf32>,
    return
  }
  func.func @transform_0(%arg0: i32) -> (i32, i32) {
    %c0_i32 = arith.constant 0 : i32
    %c0_i32_0 = arith.constant 0 : i32
    return %arg0, %c0_i32 : i32, i32
  }
  func.func @transform_1(%arg0: i32) -> (i32, i32) {
    %c0_i32 = arith.constant 0 : i32
    %c0_i32_0 = arith.constant 0 : i32
    %c0_i32_1 = arith.constant 0 : i32
    return %c0_i32, %c0_i32_0 : i32, i32
  }
  func.func @transform_2(%arg0: i32) -> (i32, i32) {
    %c0_i32 = arith.constant 0 : i32
    %c0_i32_0 = arith.constant 0 : i32
    %c0_i32_1 = arith.constant 0 : i32
    return %c0_i32, %c0_i32_0 : i32, i32
  }
  func.func @transform_3(%arg0: i32) -> (i32, i32) {
    %c0_i32 = arith.constant 0 : i32
    %c0_i32_0 = arith.constant 0 : i32
    return %arg0, %c0_i32 : i32, i32
  }
}

</mosaic_0001>

<bundles_post_ra>
// kernel: logreg_forward.1
= control target key start
LH: loop header
LB: loop body
LE: loop exit
PB: predicated region body
PF: predicated region fallthrough
CT: control target
= control target key end

     0   :  { %8 = vsyncpa [#allocation3], 0  ;;  %s3160_s0 = inlined_call_operand.hbm [shape: f32[2,3072], index: 0, kind: input, shape index: {}]   ;;  %s3161_s1 = inlined_call_operand.hbm [shape: bf16[3072,128], index: 1, kind: input, shape index: {}]   ;;  %s3162_s2 = inlined_call_operand.vmem [shape: f32[1,128], index: 2, kind: input, shape index: {}]   ;;  %s3163_s3 = inlined_call_operand.hbm [shape: f32[2,128], index: 3, kind: output, shape index: {}]  }
   0x1   :  { %9 = vsyncpa [#allocation6], 0 }
   0x2   :  { %10 = vsyncpa [#allocation4], 0 }
   0x3   :  { %14 = vsyncadd [#allocation3], 2304  ;;  %s15_s14 = sshll.u32 %s3160_s0, 4  ;;  %s3119_s15 = smov [#allocation2]   ;;  %s16_s14 = int_to_ptr.hbm [resolvable:$true] %s15_s14 }
   0x4   :  { %s17_s16 = sshll.u32 %s3119_s15, 4  ;;  %s28_s19 = sshll.u32 %s3161_s1, 4  ;;  %s18_s16 = int_to_ptr.vmem [resolvable:$true] %s17_s16  ;;  %s29_s19 = int_to_ptr.hbm [resolvable:$true] %s28_s19 }
   0x5   :  { %s3120_s20 = smov 768   ;;  %s3121_s21 = smov 48  }
   0x6   :  { %23 = dma.hbm_to_vmem [thread:$0]  %s16_s14, 768, %s18_s16, [#allocation3], %s3120_s20, %s3120_s20, %s3121_s21  }
   0x7   :  { %s3122_s22 = smov [#allocation5]   ;;  %s3123_s24 = smov 64  }
   0x8   :  { %s30_s23 = sshll.u32 %s3122_s22, 4  ;;  %s3124_s25 = smov 4   ;;  %s31_s23 = int_to_ptr.vmem [resolvable:$true] %s30_s23 }
   0x9   :  { %36 = dma.hbm_to_vmem [thread:$0]  %s29_s19, 24576, %s31_s23, [#allocation6], %s3123_s24, %s3123_s24, %s3124_s25  }
   0xa   :  { %3113 = dma.done.wait [#allocation3], 3072  }
   0xb   :  { %3114 = vsyncadd [#allocation3], 4294964224 }
   0xc   :  { %3115 = dma.done.wait [#allocation6], 24576  }
   0xd   :  { %3116 = vsyncadd [#allocation6], 4294942720  ;;  %v2846_v0 = vld [vmem:[#allocation5 + $0x38] sm:$0xff]  ;;  %v2845_v4 = vld [vmem:[#allocation5 + $0x30] sm:$0xff] }
   0xe   :  { %v2854_v1 = vld [vmem:[#allocation5 + $0x78] sm:$0xff]  ;;  %1738 = vmatpush.bf16.msra.mxu0 %v2846_v0  ;;  %v2853_v5 = vld [vmem:[#allocation5 + $0x70] sm:$0xff]  ;;  %v2844_v8 = vld [vmem:[#allocation5 + $0x28] sm:$0xff] }
   0xf   :  { %v2862_v2 = vld [vmem:[#allocation5 + $0xb8] sm:$0xff]  ;;  %1751 = vmatpush.bf16.msra.mxu1 %v2854_v1  ;;  %v2861_v6 = vld [vmem:[#allocation5 + $0xb0] sm:$0xff]  ;;  %v2852_v9 = vld [vmem:[#allocation5 + $0x68] sm:$0xff] }
  0x10   :  { %v2870_v3 = vld [vmem:[#allocation5 + $0xf8] sm:$0xff]  ;;  %1764 = vmatpush.bf16.msra.mxu2 %v2862_v2  ;;  %v2869_v7 = vld [vmem:[#allocation5 + $0xf0] sm:$0xff]  ;;  %v2860_v10 = vld [vmem:[#allocation5 + $0xa8] sm:$0xff] }
  0x11   :  { %1777 = vmatpush.bf16.msra.mxu3 %v2870_v3  ;;  %v2868_v11 = vld [vmem:[#allocation5 + $0xe8] sm:$0xff]  ;;  %v2843_v12 = vld [vmem:[#allocation5 + $0x20] sm:$0xff]  ;;  %v2842_v16 = vld [vmem:[#allocation5 + $0x18] sm:$0xff] }
  0x12   :  { %1739 = vmatpush.bf16.msra.mxu0 %v2845_v4  ;;  %v2851_v13 = vld [vmem:[#allocation5 + $0x60] sm:$0xff]  ;;  %v2850_v17 = vld [vmem:[#allocation5 + $0x58] sm:$0xff]  ;;  %v2841_v20 = vld [vmem:[#allocation5 + $0x10] sm:$0xff] }
  0x13   :  { %1752 = vmatpush.bf16.msra.mxu1 %v2853_v5  ;;  %v2859_v14 = vld [vmem:[#allocation5 + $0xa0] sm:$0xff]  ;;  %v2858_v18 = vld [vmem:[#allocation5 + $0x98] sm:$0xff]  ;;  %v53_v22 = vld [vmem:[#allocation2 + $0x30] sm:$0xff] }
  0x14   :  { %1765 = vmatpush.bf16.msra.mxu2 %v2861_v6  ;;  %v2867_v15 = vld [vmem:[#allocation5 + $0xe0] sm:$0xff]  ;;  %v2866_v19 = vld [vmem:[#allocation5 + $0xd8] sm:$0xff]  ;;  %v2849_v23 = vld [vmem:[#allocation5 + $0x50] sm:$0xff]  ;;  %97 = vst [vmem:[#allocation1 + $0x1] ss:$4 sm:$0xff] %v53_v22 }
  0x15   :  { %1778 = vmatpush.bf16.msra.mxu3 %v2869_v7  ;;  %v47_v21 = vld [vmem:[#allocation2] sm:$0xff]  ;;  %v65_v25 = vld [vmem:[#allocation2 + $0x90] sm:$0xff]  ;;  %v2840_v28 = vld [vmem:[#allocation5 + $0x8] sm:$0xff] }
  0x16   :  { %1740 = vmatpush.bf16.msra.mxu0 %v2844_v8  ;;  %v59_v24 = vld [vmem:[#allocation2 + $0x60] sm:$0xff]  ;;  %95 = vst [vmem:[#allocation1] ss:$4 sm:$0xff] %v47_v21  ;;  %v2857_v26 = vld [vmem:[#allocation5 + $0x90] sm:$0xff]  ;;  %v2848_v29 = vld [vmem:[#allocation5 + $0x48] sm:$0xff] }
  0x17   :  { %1753 = vmatpush.bf16.msra.mxu1 %v2852_v9  ;;  %v2865_v27 = vld [vmem:[#allocation5 + $0xd0] sm:$0xff]  ;;  %99 = vst [vmem:[#allocation1 + $0x2] ss:$4 sm:$0xff] %v59_v24  ;;  %v2856_v30 = vld [vmem:[#allocation5 + $0x88] sm:$0xff]  ;;  %v2839_v32 = vld [vmem:[#allocation5] sm:$0xff] }
  0x18   :  { %1766 = vmatpush.bf16.msra.mxu2 %v2860_v10  ;;  %101 = vst [vmem:[#allocation1 + $0x3] ss:$4 sm:$0xff] %v65_v25  ;;  %v2864_v31 = vld [vmem:[#allocation5 + $0xc8] sm:$0xff]  ;;  %v2847_v33 = vld [vmem:[#allocation5 + $0x40] sm:$0xff]  ;;  %v2878_v36 = vld [vmem:[#allocation5 + $0x138] sm:$0xff] }
  0x19   :  { %1779 = vmatpush.bf16.msra.mxu3 %v2868_v11  ;;  %v2855_v34 = vld [vmem:[#allocation5 + $0x80] sm:$0xff]  ;;  %v2886_v37 = vld [vmem:[#allocation5 + $0x178] sm:$0xff]  ;;  %v48_v38 = vld [vmem:[#allocation2 + $0x8] sm:$0xff] }
  0x1a   :  { %1741 = vmatpush.bf16.msra.mxu0 %v2843_v12  ;;  %v2863_v35 = vld [vmem:[#allocation5 + $0xc0] sm:$0xff]  ;;  %v2894_v39 = vld [vmem:[#allocation5 + $0x1b8] sm:$0xff]  ;;  %v49_v41 = vld [vmem:[#allocation2 + $0x10] sm:$0xff]  ;;  %103 = vst [vmem:[#allocation1 + $0x20] ss:$4 sm:$0xff] %v48_v38 }
  0x1b   :  { %1754 = vmatpush.bf16.msra.mxu1 %v2851_v13  ;;  %v2902_v40 = vld [vmem:[#allocation5 + $0x1f8] sm:$0xff]  ;;  %v55_v42 = vld [vmem:[#allocation2 + $0x40] sm:$0xff]  ;;  %v61_v43 = vld [vmem:[#allocation2 + $0x70] sm:$0xff] }
  0x1c   :  { %1767 = vmatpush.bf16.msra.mxu2 %v2859_v14  ;;  %v67_v50 = vld [vmem:[#allocation2 + $0xa0] sm:$0xff]  ;;  %v54_v53 = vld [vmem:[#allocation2 + $0x38] sm:$0xff]  ;;  %v2877_v54 = vld [vmem:[#allocation5 + $0x130] sm:$0xff] }
  0x1d   :  { %1780 = vmatpush.bf16.msra.mxu3 %v2867_v15  ;;  %v2885_v55 = vld [vmem:[#allocation5 + $0x170] sm:$0xff]  ;;  %v60_v56 = vld [vmem:[#allocation2 + $0x68] sm:$0xff]  ;;  %v66_v59 = vld [vmem:[#allocation2 + $0x98] sm:$0xff]  ;;  %105 = vst [vmem:[#allocation1 + $0x21] ss:$4 sm:$0xff] %v54_v53 }
  0x1e   :  { %1742 = vmatpush.bf16.msra.mxu0 %v2842_v16  ;;  %v2893_v57 = vld [vmem:[#allocation5 + $0x1b0] sm:$0xff]  ;;  %107 = vst [vmem:[#allocation1 + $0x22] ss:$4 sm:$0xff] %v60_v56  ;;  %v2876_v60 = vld [vmem:[#allocation5 + $0x128] sm:$0xff]  ;;  %v2875_v0 = vld [vmem:[#allocation5 + $0x120] sm:$0xff] }
  0x1f   :  { %1755 = vmatpush.bf16.msra.mxu1 %v2850_v17  ;;  %v112_v44 = vld.sshfl [vmem:[#allocation1 + $0x10] sm:$0xff pattern:$0x73625140]  ;;  %v110_v45 = vld.sshfl [vmem:[#allocation1] sm:$0xff pattern:$0x73625140] }
  0x20   :  { %1768 = vmatpush.bf16.msra.mxu2 %v2858_v18  ;;  %v113_v46 = vld.sshfl [vmem:[#allocation1 + $0x18] sm:$0xff pattern:$0x73625140]  ;;  %v111_v47 = vld.sshfl [vmem:[#allocation1 + $0x8] sm:$0xff pattern:$0x73625140]  ;;  %v176_v48 = vpack.c.bf16 %v112_v44, %v112_v44  ;;  %v174_v49 = vpack.c.bf16 %v110_v45, %v110_v45 }
  0x21   :  { %1781 = vmatpush.bf16.msra.mxu3 %v2866_v19  ;;  %118 = vst [vmem:[#allocation1] ss:$4 sm:$0xff] %v49_v41  ;;  %v177_v51 = vpack.c.bf16 %v113_v46, %v113_v46  ;;  %v175_v52 = vpack.c.bf16 %v111_v47, %v111_v47  ;;  %v2901_v58 = vld [vmem:[#allocation5 + $0x1f0] sm:$0xff]  ;;  %v2884_v61 = vld [vmem:[#allocation5 + $0x168] sm:$0xff]  ;;  %v2883_v1 = vld [vmem:[#allocation5 + $0x160] sm:$0xff] }
  0x22   :  { %1743 = vmatpush.bf16.msra.mxu0 %v2841_v20  ;;  %119 = vst [vmem:[#allocation1 + $0x1] ss:$4 sm:$0xff] %v55_v42  ;;  %v2892_v62 = vld [vmem:[#allocation5 + $0x1a8] sm:$0xff]  ;;  %v2891_v2 = vld [vmem:[#allocation5 + $0x1a0] sm:$0xff]  ;;  %v2874_v4 = vld [vmem:[#allocation5 + $0x118] sm:$0xff] }
  0x23   :  { %1756 = vmatpush.bf16.msra.mxu1 %v2849_v23  ;;  %120 = vst [vmem:[#allocation1 + $0x2] ss:$4 sm:$0xff] %v61_v43  ;;  %v2900_v63 = vld [vmem:[#allocation5 + $0x1e8] sm:$0xff]  ;;  %v2899_v3 = vld [vmem:[#allocation5 + $0x1e0] sm:$0xff]  ;;  %v2882_v5 = vld [vmem:[#allocation5 + $0x158] sm:$0xff] }
  0x24   :  { %1769 = vmatpush.bf16.msra.mxu2 %v2857_v26  ;;  %121 = vst [vmem:[#allocation1 + $0x3] ss:$4 sm:$0xff] %v67_v50  ;;  %v50_v6 = vld [vmem:[#allocation2 + $0x18] sm:$0xff]  ;;  %v56_v7 = vld [vmem:[#allocation2 + $0x48] sm:$0xff]  ;;  %v2873_v16 = vld [vmem:[#allocation5 + $0x110] sm:$0xff] }
  0x25   :  { %1782 = vmatpush.bf16.msra.mxu3 %v2865_v27  ;;  %109 = vst [vmem:[#allocation1 + $0x23] ss:$4 sm:$0xff] %v66_v59  ;;  %v62_v8 = vld [vmem:[#allocation2 + $0x78] sm:$0xff]  ;;  %v68_v15 = vld [vmem:[#allocation2 + $0xa8] sm:$0xff]  ;;  %v2881_v17 = vld [vmem:[#allocation5 + $0x150] sm:$0xff] }
  0x26   :  { %1744 = vmatpush.bf16.msra.mxu0 %v2840_v28  ;;  %v2890_v13 = vld [vmem:[#allocation5 + $0x198] sm:$0xff]  ;;  %v2889_v18 = vld [vmem:[#allocation5 + $0x190] sm:$0xff]  ;;  %v2872_v20 = vld [vmem:[#allocation5 + $0x108] sm:$0xff] }
  0x27   :  { %1757 = vmatpush.bf16.msra.mxu1 %v2848_v29  ;;  %v2898_v14 = vld [vmem:[#allocation5 + $0x1d8] sm:$0xff]  ;;  %v2897_v19 = vld [vmem:[#allocation5 + $0x1d0] sm:$0xff]  ;;  %v2880_v21 = vld [vmem:[#allocation5 + $0x148] sm:$0xff] }
  0x28   :  { %1770 = vmatpush.bf16.msra.mxu2 %v2856_v30  ;;  %v2888_v22 = vld [vmem:[#allocation5 + $0x188] sm:$0xff]  ;;  %v2871_v24 = vld [vmem:[#allocation5 + $0x100] sm:$0xff]  ;;  %v2910_v28 = vld [vmem:[#allocation5 + $0x238] sm:$0xff] }
  0x29   :  { %1783 = vmatpush.bf16.msra.mxu3 %v2864_v31  ;;  %v2896_v23 = vld [vmem:[#allocation5 + $0x1c8] sm:$0xff]  ;;  %v2879_v25 = vld [vmem:[#allocation5 + $0x140] sm:$0xff]  ;;  %v2918_v29 = vld [vmem:[#allocation5 + $0x278] sm:$0xff] }
  0x2a   :  { %1745 = vmatpush.bf16.msra.mxu0 %v2839_v32  ;;  %v2887_v26 = vld [vmem:[#allocation5 + $0x180] sm:$0xff]  ;;  %v2926_v30 = vld [vmem:[#allocation5 + $0x2b8] sm:$0xff]  ;;  %v2925_v38 = vld [vmem:[#allocation5 + $0x2b0] sm:$0xff] }
  0x2b   :  { %1758 = vmatpush.bf16.msra.mxu1 %v2847_v33  ;;  %v2895_v27 = vld [vmem:[#allocation5 + $0x1c0] sm:$0xff]  ;;  %v2934_v31 = vld [vmem:[#allocation5 + $0x2f8] sm:$0xff]  ;;  %v2916_v41 = vld [vmem:[#allocation5 + $0x268] sm:$0xff] }
  0x2c   :  { %1771 = vmatpush.bf16.msra.mxu2 %v2855_v34  ;;  %v116_v9 = vld.sshfl [vmem:[#allocation1 + $0x30] sm:$0xff pattern:$0x73625140]  ;;  %v114_v10 = vld.sshfl [vmem:[#allocation1 + $0x20] sm:$0xff pattern:$0x73625140] }
  0x2d   :  { %1784 = vmatpush.bf16.msra.mxu3 %v2863_v35  ;;  %1746 = vmatmul.bf16.vlgmr.msra.gmra.mxu0 %v174_v49  ;;  %v117_v11 = vld.sshfl [vmem:[#allocation1 + $0x38] sm:$0xff pattern:$0x73625140]  ;;  %v115_v12 = vld.sshfl [vmem:[#allocation1 + $0x28] sm:$0xff pattern:$0x73625140]  ;;  %v180_v32 = vpack.c.bf16 %v116_v9, %v116_v9  ;;  %v178_v33 = vpack.c.bf16 %v114_v10, %v114_v10 }
  0x2e   :  { %1790 = vmatpush.bf16.msrb.mxu0 %v2878_v36  ;;  %1759 = vmatmul.bf16.vlgmr.msra.gmra.mxu1 %v175_v52  ;;  %122 = vst [vmem:[#allocation1 + $0x20] ss:$4 sm:$0xff] %v50_v6  ;;  %v181_v34 = vpack.c.bf16 %v117_v11, %v117_v11  ;;  %v179_v35 = vpack.c.bf16 %v115_v12, %v115_v12  ;;  %v2909_v36 = vld [vmem:[#allocation5 + $0x230] sm:$0xff]  ;;  %v2924_v42 = vld [vmem:[#allocation5 + $0x2a8] sm:$0xff]  ;;  %v2907_v44 = vld [vmem:[#allocation5 + $0x220] sm:$0xff] }
  0x2f   :  { %1803 = vmatpush.bf16.msrb.mxu1 %v2886_v37  ;;  %1772 = vmatmul.bf16.vlgmr.msra.gmra.mxu2 %v176_v48  ;;  %123 = vst [vmem:[#allocation1 + $0x21] ss:$4 sm:$0xff] %v56_v7  ;;  %v2917_v37 = vld [vmem:[#allocation5 + $0x270] sm:$0xff]  ;;  %v2932_v43 = vld [vmem:[#allocation5 + $0x2e8] sm:$0xff]  ;;  %v2915_v45 = vld [vmem:[#allocation5 + $0x260] sm:$0xff] }
  0x30   :  { %1816 = vmatpush.bf16.msrb.mxu2 %v2894_v39  ;;  %1785 = vmatmul.bf16.vlgmr.msra.gmra.mxu3 %v177_v51  ;;  %124 = vst [vmem:[#allocation1 + $0x22] ss:$4 sm:$0xff] %v62_v8  ;;  %v2933_v39 = vld [vmem:[#allocation5 + $0x2f0] sm:$0xff]  ;;  %v2923_v46 = vld [vmem:[#allocation5 + $0x2a0] sm:$0xff]  ;;  %v2906_v48 = vld [vmem:[#allocation5 + $0x218] sm:$0xff] }
  0x31   :  { %1829 = vmatpush.bf16.msrb.mxu3 %v2902_v40  ;;  %125 = vst [vmem:[#allocation1 + $0x23] ss:$4 sm:$0xff] %v68_v15  ;;  %v2908_v40 = vld [vmem:[#allocation5 + $0x228] sm:$0xff]  ;;  %v2931_v47 = vld [vmem:[#allocation5 + $0x2e0] sm:$0xff]  ;;  %v2914_v49 = vld [vmem:[#allocation5 + $0x258] sm:$0xff] }
  0x32   :  { %1791 = vmatpush.bf16.msrb.mxu0 %v2877_v54  ;;  %v2922_v50 = vld [vmem:[#allocation5 + $0x298] sm:$0xff]  ;;  %v2905_v52 = vld [vmem:[#allocation5 + $0x210] sm:$0xff]  ;;  %v2904_v56 = vld [vmem:[#allocation5 + $0x208] sm:$0xff] }
  0x33   :  { %1804 = vmatpush.bf16.msrb.mxu1 %v2885_v55  ;;  %v2930_v51 = vld [vmem:[#allocation5 + $0x2d8] sm:$0xff]  ;;  %v2913_v53 = vld [vmem:[#allocation5 + $0x250] sm:$0xff]  ;;  %v2928_v59 = vld [vmem:[#allocation5 + $0x2c8] sm:$0xff] }
  0x34   :  { %1817 = vmatpush.bf16.msrb.mxu2 %v2893_v57  ;;  %v2921_v54 = vld [vmem:[#allocation5 + $0x290] sm:$0xff]  ;;  %v2912_v57 = vld [vmem:[#allocation5 + $0x248] sm:$0xff]  ;;  %v2958_v6 = vld [vmem:[#allocation5 + $0x3b8] sm:$0xff] }
  0x35   :  { %1830 = vmatpush.bf16.msrb.mxu3 %v2901_v58  ;;  %v2929_v55 = vld [vmem:[#allocation5 + $0x2d0] sm:$0xff]  ;;  %v2920_v58 = vld [vmem:[#allocation5 + $0x288] sm:$0xff]  ;;  %v2966_v7 = vld [vmem:[#allocation5 + $0x3f8] sm:$0xff] }
  0x36   :  { %1792 = vmatpush.bf16.msrb.mxu0 %v2876_v60  ;;  %v2903_v60 = vld [vmem:[#allocation5 + $0x200] sm:$0xff]  ;;  %v2941_v12 = vld [vmem:[#allocation5 + $0x330] sm:$0xff] }
  0x37   :  { %1805 = vmatpush.bf16.msrb.mxu1 %v2884_v61  ;;  %v2911_v61 = vld [vmem:[#allocation5 + $0x240] sm:$0xff]  ;;  %v2965_v15 = vld [vmem:[#allocation5 + $0x3f0] sm:$0xff] }
  0x38   :  { %1818 = vmatpush.bf16.msrb.mxu2 %v2892_v62  ;;  %v2919_v62 = vld [vmem:[#allocation5 + $0x280] sm:$0xff] }
  0x39   :  { %1831 = vmatpush.bf16.msrb.mxu3 %v2900_v63  ;;  %v2927_v63 = vld [vmem:[#allocation5 + $0x2c0] sm:$0xff] }
  0x3a   :  { %1793 = vmatpush.bf16.msrb.mxu0 %v2875_v0  ;;  %v2942_v0 = vld [vmem:[#allocation5 + $0x338] sm:$0xff] }
  0x3b   :  { %1806 = vmatpush.bf16.msrb.mxu1 %v2883_v1  ;;  %v2950_v1 = vld [vmem:[#allocation5 + $0x378] sm:$0xff] }
  0x3c   :  { %1819 = vmatpush.bf16.msrb.mxu2 %v2891_v2  ;;  %v126_v2 = vld.sshfl [vmem:[#allocation1] sm:$0xff pattern:$0x73625140] }
  0x3d   :  { %1832 = vmatpush.bf16.msrb.mxu3 %v2899_v3  ;;  %v128_v3 = vld.sshfl [vmem:[#allocation1 + $0x10] sm:$0xff pattern:$0x73625140]  ;;  %v182_v8 = vpack.c.bf16 %v126_v2, %v126_v2  ;;  %v2987_v2 = vld [vmem:[#allocation5 + $0x4a0] sm:$0xff] }
  0x3e   :  { %1794 = vmatpush.bf16.msrb.mxu0 %v2874_v4  ;;  %v127_v4 = vld.sshfl [vmem:[#allocation1 + $0x8] sm:$0xff pattern:$0x73625140]  ;;  %v184_v9 = vpack.c.bf16 %v128_v3, %v128_v3 }
  0x3f   :  { %1807 = vmatpush.bf16.msrb.mxu1 %v2882_v5  ;;  %v129_v5 = vld.sshfl [vmem:[#allocation1 + $0x18] sm:$0xff pattern:$0x73625140]  ;;  %v183_v10 = vpack.c.bf16 %v127_v4, %v127_v4  ;;  %v2995_v3 = vld [vmem:[#allocation5 + $0x4e0] sm:$0xff]  ;;  %v2970_v4 = vld [vmem:[#allocation5 + $0x418] sm:$0xff] }
  0x40   :  { %1820 = vmatpush.bf16.msrb.mxu2 %v2890_v13  ;;  %v185_v11 = vpack.c.bf16 %v129_v5, %v129_v5  ;;  %v2949_v13 = vld [vmem:[#allocation5 + $0x370] sm:$0xff]  ;;  %v2978_v5 = vld [vmem:[#allocation5 + $0x458] sm:$0xff] }
  0x41   :  { %1833 = vmatpush.bf16.msrb.mxu3 %v2898_v14  ;;  %v2957_v14 = vld [vmem:[#allocation5 + $0x3b0] sm:$0xff] }
  0x42   :  { %1795 = vmatpush.bf16.msrb.mxu0 %v2873_v16  ;;  %v2940_v16 = vld [vmem:[#allocation5 + $0x328] sm:$0xff] }
  0x43   :  { %1808 = vmatpush.bf16.msrb.mxu1 %v2881_v17  ;;  %v2948_v17 = vld [vmem:[#allocation5 + $0x368] sm:$0xff] }
  0x44   :  { %1821 = vmatpush.bf16.msrb.mxu2 %v2889_v18  ;;  %v2956_v18 = vld [vmem:[#allocation5 + $0x3a8] sm:$0xff] }
  0x45   :  { %1834 = vmatpush.bf16.msrb.mxu3 %v2897_v19  ;;  %v2964_v19 = vld [vmem:[#allocation5 + $0x3e8] sm:$0xff] }
  0x46   :  { %1796 = vmatpush.bf16.msrb.mxu0 %v2872_v20  ;;  %v2939_v20 = vld [vmem:[#allocation5 + $0x320] sm:$0xff] }
  0x47   :  { %1809 = vmatpush.bf16.msrb.mxu1 %v2880_v21  ;;  %v2947_v21 = vld [vmem:[#allocation5 + $0x360] sm:$0xff] }
  0x48   :  { %1822 = vmatpush.bf16.msrb.mxu2 %v2888_v22  ;;  %v2955_v22 = vld [vmem:[#allocation5 + $0x3a0] sm:$0xff] }
  0x49   :  { %1835 = vmatpush.bf16.msrb.mxu3 %v2896_v23  ;;  %v2963_v23 = vld [vmem:[#allocation5 + $0x3e0] sm:$0xff] }
  0x4a   :  { %1797 = vmatpush.bf16.msrb.mxu0 %v2871_v24  ;;  %v2938_v24 = vld [vmem:[#allocation5 + $0x318] sm:$0xff] }
  0x4b   :  { %1810 = vmatpush.bf16.msrb.mxu1 %v2879_v25  ;;  %v2946_v25 = vld [vmem:[#allocation5 + $0x358] sm:$0xff] }
  0x4c   :  { %1823 = vmatpush.bf16.msrb.mxu2 %v2887_v26  ;;  %v2954_v26 = vld [vmem:[#allocation5 + $0x398] sm:$0xff] }
  0x4d   :  { %1836 = vmatpush.bf16.msrb.mxu3 %v2895_v27  ;;  %1798 = vmatmul.bf16.vlgmr.msrb.gmra.mxu0 %v178_v33  ;;  %v2962_v27 = vld [vmem:[#allocation5 + $0x3d8] sm:$0xff]  ;;  %v2944_v33 = vld [vmem:[#allocation5 + $0x348] sm:$0xff] }
  0x4e   :  { %1842 = vmatpush.bf16.msra.mxu0 %v2910_v28  ;;  %1811 = vmatmul.bf16.vlgmr.msrb.gmra.mxu1 %v179_v35  ;;  %v2937_v28 = vld [vmem:[#allocation5 + $0x310] sm:$0xff] }
  0x4f   :  { %1855 = vmatpush.bf16.msra.mxu1 %v2918_v29  ;;  %1824 = vmatmul.bf16.vlgmr.msrb.gmra.mxu2 %v180_v32  ;;  %v2945_v29 = vld [vmem:[#allocation5 + $0x350] sm:$0xff]  ;;  %v2936_v32 = vld [vmem:[#allocation5 + $0x308] sm:$0xff] }
  0x50   :  { %1868 = vmatpush.bf16.msra.mxu2 %v2926_v30  ;;  %1837 = vmatmul.bf16.vlgmr.msrb.gmra.mxu3 %v181_v34  ;;  %v2953_v30 = vld [vmem:[#allocation5 + $0x390] sm:$0xff]  ;;  %v51_v34 = vld [vmem:[#allocation2 + $0x20] sm:$0xff] }
  0x51   :  { %1881 = vmatpush.bf16.msra.mxu3 %v2934_v31  ;;  %v2961_v31 = vld [vmem:[#allocation5 + $0x3d0] sm:$0xff]  ;;  %134 = vst [vmem:[#allocation1] ss:$4 sm:$0xff] %v51_v34 }
  0x52   :  { %1843 = vmatpush.bf16.msra.mxu0 %v2909_v36  ;;  %v57_v35 = vld [vmem:[#allocation2 + $0x50] sm:$0xff]  ;;  %v63_v36 = vld [vmem:[#allocation2 + $0x80] sm:$0xff] }
  0x53   :  { %1856 = vmatpush.bf16.msra.mxu1 %v2917_v37  ;;  %v2952_v37 = vld [vmem:[#allocation5 + $0x388] sm:$0xff]  ;;  %135 = vst [vmem:[#allocation1 + $0x1] ss:$4 sm:$0xff] %v57_v35 }
  0x54   :  { %1869 = vmatpush.bf16.msra.mxu2 %v2925_v38  ;;  %v2960_v38 = vld [vmem:[#allocation5 + $0x3c8] sm:$0xff]  ;;  %136 = vst [vmem:[#allocation1 + $0x2] ss:$4 sm:$0xff] %v63_v36  ;;  %v3005_v36 = vld [vmem:[#allocation5 + $0x530] sm:$0xff] }
  0x55   :  { %1882 = vmatpush.bf16.msra.mxu3 %v2933_v39  ;;  %v69_v39 = vld [vmem:[#allocation2 + $0xb0] sm:$0xff] }
  0x56   :  { %1844 = vmatpush.bf16.msra.mxu0 %v2908_v40  ;;  %v2935_v40 = vld [vmem:[#allocation5 + $0x300] sm:$0xff]  ;;  %137 = vst [vmem:[#allocation1 + $0x3] ss:$4 sm:$0xff] %v69_v39  ;;  %v3029_v39 = vld [vmem:[#allocation5 + $0x5f0] sm:$0xff] }
  0x57   :  { %1857 = vmatpush.bf16.msra.mxu1 %v2916_v41  ;;  %v2943_v41 = vld [vmem:[#allocation5 + $0x340] sm:$0xff] }
  0x58   :  { %1870 = vmatpush.bf16.msra.mxu2 %v2924_v42  ;;  %v2951_v42 = vld [vmem:[#allocation5 + $0x380] sm:$0xff] }
  0x59   :  { %1883 = vmatpush.bf16.msra.mxu3 %v2932_v43  ;;  %v2959_v43 = vld [vmem:[#allocation5 + $0x3c0] sm:$0xff] }
  0x5a   :  { %1845 = vmatpush.bf16.msra.mxu0 %v2907_v44  ;;  %v2974_v44 = vld [vmem:[#allocation5 + $0x438] sm:$0xff] }
  0x5b   :  { %1858 = vmatpush.bf16.msra.mxu1 %v2915_v45  ;;  %v2982_v45 = vld [vmem:[#allocation5 + $0x478] sm:$0xff] }
  0x5c   :  { %1871 = vmatpush.bf16.msra.mxu2 %v2923_v46  ;;  %v130_v46 = vld.sshfl [vmem:[#allocation1 + $0x20] sm:$0xff pattern:$0x73625140] }
  0x5d   :  { %1884 = vmatpush.bf16.msra.mxu3 %v2931_v47  ;;  %v132_v47 = vld.sshfl [vmem:[#allocation1 + $0x30] sm:$0xff pattern:$0x73625140] }
  0x5e   :  { %1846 = vmatpush.bf16.msra.mxu0 %v2906_v48  ;;  %v131_v48 = vld.sshfl [vmem:[#allocation1 + $0x28] sm:$0xff pattern:$0x73625140] }
  0x5f   :  { %1859 = vmatpush.bf16.msra.mxu1 %v2914_v49  ;;  %v133_v49 = vld.sshfl [vmem:[#allocation1 + $0x38] sm:$0xff pattern:$0x73625140] }
  0x60   :  { %1872 = vmatpush.bf16.msra.mxu2 %v2922_v50  ;;  %v2990_v50 = vld [vmem:[#allocation5 + $0x4b8] sm:$0xff] }
  0x61   :  { %1885 = vmatpush.bf16.msra.mxu3 %v2930_v51  ;;  %v2998_v51 = vld [vmem:[#allocation5 + $0x4f8] sm:$0xff] }
  0x62   :  { %1847 = vmatpush.bf16.msra.mxu0 %v2905_v52  ;;  %v186_v52 = vpack.c.bf16 %v130_v46, %v130_v46  ;;  %v3003_v46 = vld [vmem:[#allocation5 + $0x520] sm:$0xff] }
  0x63   :  { %1860 = vmatpush.bf16.msra.mxu1 %v2913_v53  ;;  %v188_v53 = vpack.c.bf16 %v132_v47, %v132_v47  ;;  %v3011_v47 = vld [vmem:[#allocation5 + $0x560] sm:$0xff] }
  0x64   :  { %1873 = vmatpush.bf16.msra.mxu2 %v2921_v54  ;;  %v187_v54 = vpack.c.bf16 %v131_v48, %v131_v48 }
  0x65   :  { %1886 = vmatpush.bf16.msra.mxu3 %v2929_v55  ;;  %v189_v55 = vpack.c.bf16 %v133_v49, %v133_v49 }
  0x66   :  { %1848 = vmatpush.bf16.msra.mxu0 %v2904_v56  ;;  %v2973_v56 = vld [vmem:[#allocation5 + $0x430] sm:$0xff] }
  0x67   :  { %1861 = vmatpush.bf16.msra.mxu1 %v2912_v57  ;;  %v2981_v57 = vld [vmem:[#allocation5 + $0x470] sm:$0xff] }
  0x68   :  { %1874 = vmatpush.bf16.msra.mxu2 %v2920_v58  ;;  %v2989_v58 = vld [vmem:[#allocation5 + $0x4b0] sm:$0xff] }
  0x69   :  { %1887 = vmatpush.bf16.msra.mxu3 %v2928_v59  ;;  %v2997_v59 = vld [vmem:[#allocation5 + $0x4f0] sm:$0xff] }
  0x6a   :  { %1849 = vmatpush.bf16.msra.mxu0 %v2903_v60  ;;  %v2972_v60 = vld [vmem:[#allocation5 + $0x428] sm:$0xff] }
  0x6b   :  { %1862 = vmatpush.bf16.msra.mxu1 %v2911_v61  ;;  %v2980_v61 = vld [vmem:[#allocation5 + $0x468] sm:$0xff] }
  0x6c   :  { %1875 = vmatpush.bf16.msra.mxu2 %v2919_v62  ;;  %v2988_v62 = vld [vmem:[#allocation5 + $0x4a8] sm:$0xff] }
  0x6d   :  { %1888 = vmatpush.bf16.msra.mxu3 %v2927_v63  ;;  %1850 = vmatmul.bf16.vlgmr.msra.gmra.mxu0 %v182_v8  ;;  %v2996_v63 = vld [vmem:[#allocation5 + $0x4e8] sm:$0xff]  ;;  %v2969_v8 = vld [vmem:[#allocation5 + $0x410] sm:$0xff] }
  0x6e   :  { %1894 = vmatpush.bf16.msrb.mxu0 %v2942_v0  ;;  %1863 = vmatmul.bf16.vlgmr.msra.gmra.mxu1 %v183_v10  ;;  %v2971_v0 = vld [vmem:[#allocation5 + $0x420] sm:$0xff]  ;;  %v2985_v10 = vld [vmem:[#allocation5 + $0x490] sm:$0xff] }
  0x6f   :  { %1907 = vmatpush.bf16.msrb.mxu1 %v2950_v1  ;;  %1876 = vmatmul.bf16.vlgmr.msra.gmra.mxu2 %v184_v9  ;;  %v2979_v1 = vld [vmem:[#allocation5 + $0x460] sm:$0xff]  ;;  %v2977_v9 = vld [vmem:[#allocation5 + $0x450] sm:$0xff] }
  0x70   :  { %1920 = vmatpush.bf16.msrb.mxu2 %v2958_v6  ;;  %1889 = vmatmul.bf16.vlgmr.msra.gmra.mxu3 %v185_v11  ;;  %v2986_v6 = vld [vmem:[#allocation5 + $0x498] sm:$0xff]  ;;  %v2993_v11 = vld [vmem:[#allocation5 + $0x4d0] sm:$0xff] }
  0x71   :  { %1933 = vmatpush.bf16.msrb.mxu3 %v2966_v7  ;;  %v2994_v7 = vld [vmem:[#allocation5 + $0x4d8] sm:$0xff] }
  0x72   :  { %1895 = vmatpush.bf16.msrb.mxu0 %v2941_v12  ;;  %v2968_v12 = vld [vmem:[#allocation5 + $0x408] sm:$0xff] }
  0x73   :  { %1908 = vmatpush.bf16.msrb.mxu1 %v2949_v13  ;;  %v52_v13 = vld [vmem:[#allocation2 + $0x28] sm:$0xff] }
  0x74   :  { %1921 = vmatpush.bf16.msrb.mxu2 %v2957_v14  ;;  %v58_v14 = vld [vmem:[#allocation2 + $0x58] sm:$0xff]  ;;  %138 = vst [vmem:[#allocation1 + $0x20] ss:$4 sm:$0xff] %v52_v13 }
  0x75   :  { %1934 = vmatpush.bf16.msrb.mxu3 %v2965_v15  ;;  %v2976_v15 = vld [vmem:[#allocation5 + $0x448] sm:$0xff]  ;;  %139 = vst [vmem:[#allocation1 + $0x21] ss:$4 sm:$0xff] %v58_v14 }
  0x76   :  { %1896 = vmatpush.bf16.msrb.mxu0 %v2940_v16  ;;  %v64_v16 = vld [vmem:[#allocation2 + $0x88] sm:$0xff] }
  0x77   :  { %1909 = vmatpush.bf16.msrb.mxu1 %v2948_v17  ;;  %v70_v17 = vld [vmem:[#allocation2 + $0xb8] sm:$0xff]  ;;  %140 = vst [vmem:[#allocation1 + $0x22] ss:$4 sm:$0xff] %v64_v16 }
  0x78   :  { %1922 = vmatpush.bf16.msrb.mxu2 %v2956_v18  ;;  %v2984_v18 = vld [vmem:[#allocation5 + $0x488] sm:$0xff]  ;;  %141 = vst [vmem:[#allocation1 + $0x23] ss:$4 sm:$0xff] %v70_v17 }
  0x79   :  { %1935 = vmatpush.bf16.msrb.mxu3 %v2964_v19  ;;  %v2992_v19 = vld [vmem:[#allocation5 + $0x4c8] sm:$0xff] }
  0x7a   :  { %1897 = vmatpush.bf16.msrb.mxu0 %v2939_v20  ;;  %v2967_v20 = vld [vmem:[#allocation5 + $0x400] sm:$0xff] }
  0x7b   :  { %1910 = vmatpush.bf16.msrb.mxu1 %v2947_v21  ;;  %v2975_v21 = vld [vmem:[#allocation5 + $0x440] sm:$0xff] }
  0x7c   :  { %1923 = vmatpush.bf16.msrb.mxu2 %v2955_v22  ;;  %v2983_v22 = vld [vmem:[#allocation5 + $0x480] sm:$0xff] }
  0x7d   :  { %1936 = vmatpush.bf16.msrb.mxu3 %v2963_v23  ;;  %v2991_v23 = vld [vmem:[#allocation5 + $0x4c0] sm:$0xff] }
  0x7e   :  { %1898 = vmatpush.bf16.msrb.mxu0 %v2938_v24  ;;  %v3006_v24 = vld [vmem:[#allocation5 + $0x538] sm:$0xff] }
  0x7f   :  { %1911 = vmatpush.bf16.msrb.mxu1 %v2946_v25  ;;  %v3014_v25 = vld [vmem:[#allocation5 + $0x578] sm:$0xff]  ;;  %v147_v14 = vld.sshfl [vmem:[#allocation1 + $0x28] sm:$0xff pattern:$0x73625140] }
  0x80   :  { %1924 = vmatpush.bf16.msrb.mxu2 %v2954_v26  ;;  %v142_v26 = vld.sshfl [vmem:[#allocation1] sm:$0xff pattern:$0x73625140]  ;;  %v149_v16 = vld.sshfl [vmem:[#allocation1 + $0x38] sm:$0xff pattern:$0x73625140] }
  0x81   :  { %1937 = vmatpush.bf16.msrb.mxu3 %v2962_v27  ;;  %v144_v27 = vld.sshfl [vmem:[#allocation1 + $0x10] sm:$0xff pattern:$0x73625140]  ;;  %v146_v13 = vld.sshfl [vmem:[#allocation1 + $0x20] sm:$0xff pattern:$0x73625140] }
  0x82   :  { %1899 = vmatpush.bf16.msrb.mxu0 %v2937_v28  ;;  %v143_v28 = vld.sshfl [vmem:[#allocation1 + $0x8] sm:$0xff pattern:$0x73625140]  ;;  %v194_v17 = vpack.c.bf16 %v146_v13, %v146_v13 }
  0x83   :  { %1912 = vmatpush.bf16.msrb.mxu1 %v2945_v29  ;;  %v145_v29 = vld.sshfl [vmem:[#allocation1 + $0x18] sm:$0xff pattern:$0x73625140]  ;;  %v191_v34 = vpack.c.bf16 %v143_v28, %v143_v28 }
  0x84   :  { %1925 = vmatpush.bf16.msrb.mxu2 %v2953_v30  ;;  %v3022_v30 = vld [vmem:[#allocation5 + $0x5b8] sm:$0xff]  ;;  %v193_v35 = vpack.c.bf16 %v145_v29, %v145_v29 }
  0x85   :  { %1938 = vmatpush.bf16.msrb.mxu3 %v2961_v31  ;;  %v3030_v31 = vld [vmem:[#allocation5 + $0x5f8] sm:$0xff] }
  0x86   :  { %1900 = vmatpush.bf16.msrb.mxu0 %v2936_v32  ;;  %v190_v32 = vpack.c.bf16 %v142_v26, %v142_v26 }
  0x87   :  { %1913 = vmatpush.bf16.msrb.mxu1 %v2944_v33  ;;  %v192_v33 = vpack.c.bf16 %v144_v27, %v144_v27 }
  0x88   :  { %1926 = vmatpush.bf16.msrb.mxu2 %v2952_v37  ;;  %v3013_v37 = vld [vmem:[#allocation5 + $0x570] sm:$0xff] }
  0x89   :  { %1939 = vmatpush.bf16.msrb.mxu3 %v2960_v38  ;;  %v3021_v38 = vld [vmem:[#allocation5 + $0x5b0] sm:$0xff] }
  0x8a   :  { %1901 = vmatpush.bf16.msrb.mxu0 %v2935_v40  ;;  %v3004_v40 = vld [vmem:[#allocation5 + $0x528] sm:$0xff] }
  0x8b   :  { %1914 = vmatpush.bf16.msrb.mxu1 %v2943_v41  ;;  %v3012_v41 = vld [vmem:[#allocation5 + $0x568] sm:$0xff] }
  0x8c   :  { %1927 = vmatpush.bf16.msrb.mxu2 %v2951_v42  ;;  %v3040_v42 = vld [vmem:[%s3162_s2] ss:$0 sm:$0xff] }
  0x8d   :  { %1940 = vmatpush.bf16.msrb.mxu3 %v2959_v43  ;;  %1902 = vmatmul.bf16.vlgmr.msrb.gmra.mxu0 %v186_v52  ;;  %v3020_v43 = vld [vmem:[#allocation5 + $0x5a8] sm:$0xff] }
  0x8e   :  { %1946 = vmatpush.bf16.msra.mxu0 %v2974_v44  ;;  %1915 = vmatmul.bf16.vlgmr.msrb.gmra.mxu1 %v187_v54  ;;  %v3028_v44 = vld [vmem:[#allocation5 + $0x5e8] sm:$0xff]  ;;  %v3010_v54 = vld [vmem:[#allocation5 + $0x558] sm:$0xff] }
  0x8f   :  { %1959 = vmatpush.bf16.msra.mxu1 %v2982_v45  ;;  %1928 = vmatmul.bf16.vlgmr.msrb.gmra.mxu2 %v188_v53  ;;  %v3002_v53 = vld [vmem:[#allocation5 + $0x518] sm:$0xff] }
  0x90   :  { %1972 = vmatpush.bf16.msra.mxu2 %v2990_v50  ;;  %1941 = vmatmul.bf16.vlgmr.msrb.gmra.mxu3 %v189_v55  ;;  %v3019_v50 = vld [vmem:[#allocation5 + $0x5a0] sm:$0xff]  ;;  %v3018_v55 = vld [vmem:[#allocation5 + $0x598] sm:$0xff] }
  0x91   :  { %1985 = vmatpush.bf16.msra.mxu3 %v2998_v51  ;;  %v3027_v51 = vld [vmem:[#allocation5 + $0x5e0] sm:$0xff] }
  0x92   :  { %1947 = vmatpush.bf16.msra.mxu0 %v2973_v56  ;;  %v3026_v56 = vld [vmem:[#allocation5 + $0x5d8] sm:$0xff] }
  0x93   :  { %1960 = vmatpush.bf16.msra.mxu1 %v2981_v57 }
  0x94   :  { %1973 = vmatpush.bf16.msra.mxu2 %v2989_v58 }
  0x95   :  { %1986 = vmatpush.bf16.msra.mxu3 %v2997_v59 }
  0x96   :  { %1948 = vmatpush.bf16.msra.mxu0 %v2972_v60 }
  0x97   :  { %1961 = vmatpush.bf16.msra.mxu1 %v2980_v61  ;;  %v3001_v61 = vld [vmem:[#allocation5 + $0x510] sm:$0xff] }
  0x98   :  { %1974 = vmatpush.bf16.msra.mxu2 %v2988_v62  ;;  %v3009_v62 = vld [vmem:[#allocation5 + $0x550] sm:$0xff] }
  0x99   :  { %1987 = vmatpush.bf16.msra.mxu3 %v2996_v63 }
  0x9a   :  { %1949 = vmatpush.bf16.msra.mxu0 %v2971_v0 }
  0x9b   :  { %1962 = vmatpush.bf16.msra.mxu1 %v2979_v1  ;;  %v3017_v1 = vld [vmem:[#allocation5 + $0x590] sm:$0xff] }
  0x9c   :  { %1975 = vmatpush.bf16.msra.mxu2 %v2987_v2  ;;  %v3025_v2 = vld [vmem:[#allocation5 + $0x5d0] sm:$0xff] }
  0x9d   :  { %1988 = vmatpush.bf16.msra.mxu3 %v2995_v3  ;;  %v3000_v3 = vld [vmem:[#allocation5 + $0x508] sm:$0xff] }
  0x9e   :  { %1950 = vmatpush.bf16.msra.mxu0 %v2970_v4  ;;  %v3008_v4 = vld [vmem:[#allocation5 + $0x548] sm:$0xff] }
  0x9f   :  { %1963 = vmatpush.bf16.msra.mxu1 %v2978_v5  ;;  %v3016_v5 = vld [vmem:[#allocation5 + $0x588] sm:$0xff] }
  0xa0   :  { %1976 = vmatpush.bf16.msra.mxu2 %v2986_v6  ;;  %v3024_v6 = vld [vmem:[#allocation5 + $0x5c8] sm:$0xff] }
  0xa1   :  { %1989 = vmatpush.bf16.msra.mxu3 %v2994_v7 }
  0xa2   :  { %1951 = vmatpush.bf16.msra.mxu0 %v2969_v8  ;;  %v2999_v8 = vld [vmem:[#allocation5 + $0x500] sm:$0xff] }
  0xa3   :  { %1964 = vmatpush.bf16.msra.mxu1 %v2977_v9 }
  0xa4   :  { %1977 = vmatpush.bf16.msra.mxu2 %v2985_v10  ;;  %v3007_v10 = vld [vmem:[#allocation5 + $0x540] sm:$0xff] }
  0xa5   :  { %1990 = vmatpush.bf16.msra.mxu3 %v2993_v11  ;;  %v3015_v11 = vld [vmem:[#allocation5 + $0x580] sm:$0xff] }
  0xa6   :  { %1952 = vmatpush.bf16.msra.mxu0 %v2968_v12  ;;  %v3023_v12 = vld [vmem:[#allocation5 + $0x5c0] sm:$0xff] }
  0xa7   :  { %1965 = vmatpush.bf16.msra.mxu1 %v2976_v15  ;;  %v148_v15 = vld.sshfl [vmem:[#allocation1 + $0x30] sm:$0xff pattern:$0x73625140] }
  0xa8   :  { %1978 = vmatpush.bf16.msra.mxu2 %v2984_v18  ;;  %v195_v18 = vpack.c.bf16 %v147_v14, %v147_v14 }
  0xa9   :  { %1991 = vmatpush.bf16.msra.mxu3 %v2992_v19  ;;  %v196_v19 = vpack.c.bf16 %v148_v15, %v148_v15 }
  0xaa   :  { %1953 = vmatpush.bf16.msra.mxu0 %v2967_v20  ;;  %v1747_v45 = vpop.f32.mrf.mxu0  ;;  %v197_v20 = vpack.c.bf16 %v149_v16, %v149_v16 }
  0xab   :  { %1966 = vmatpush.bf16.msra.mxu1 %v2975_v21  ;;  %v1748_v48 = vadd.f32 %v3040_v42, %v1747_v45  ;;  %v1760_v49 = vpop.f32.mrf.mxu1 }
  0xac   :  { %1979 = vmatpush.bf16.msra.mxu2 %v2983_v22 }
  0xad   :  { %1992 = vmatpush.bf16.msra.mxu3 %v2991_v23  ;;  %1954 = vmatmul.bf16.vlgmr.msra.gmra.mxu0 %v190_v32  ;;  %v1761_v52 = vadd.f32 %v1760_v49, %v1748_v48 }
  0xae   :  { %1998 = vmatpush.bf16.msrb.mxu0 %v3006_v24  ;;  %1967 = vmatmul.bf16.vlgmr.msra.gmra.mxu1 %v191_v34 }
  0xaf   :  { %2011 = vmatpush.bf16.msrb.mxu1 %v3014_v25  ;;  %1980 = vmatmul.bf16.vlgmr.msra.gmra.mxu2 %v192_v33 }
  0xb0   :  { %2024 = vmatpush.bf16.msrb.mxu2 %v3022_v30  ;;  %1993 = vmatmul.bf16.vlgmr.msra.gmra.mxu3 %v193_v35 }
  0xb1   :  { %2037 = vmatpush.bf16.msrb.mxu3 %v3030_v31 }
  0xb2   :  { %1999 = vmatpush.bf16.msrb.mxu0 %v3005_v36  ;;  %v1773_v57 = vpop.f32.mrf.mxu2  ;;  %v1749_v60 = vpop.f32.mrf.mxu0 }
  0xb3   :  { %2012 = vmatpush.bf16.msrb.mxu1 %v3013_v37  ;;  %v1774_v58 = vadd.f32 %v1773_v57, %v1761_v52  ;;  %v1786_v59 = vpop.f32.mrf.mxu3  ;;  %v1762_v0 = vpop.f32.mrf.mxu1 }
  0xb4   :  { %2025 = vmatpush.bf16.msrb.mxu2 %v3021_v38 }
  0xb5   :  { %2038 = vmatpush.bf16.msrb.mxu3 %v3029_v39  ;;  %v1787_v63 = vadd.f32 %v1786_v59, %v1774_v58 }
  0xb6   :  { %2000 = vmatpush.bf16.msrb.mxu0 %v3004_v40 }
  0xb7   :  { %2013 = vmatpush.bf16.msrb.mxu1 %v3012_v41 }
  0xb8   :  { %2026 = vmatpush.bf16.msrb.mxu2 %v3020_v43 }
  0xb9   :  { %2039 = vmatpush.bf16.msrb.mxu3 %v3028_v44 }
  0xba   :  { %2001 = vmatpush.bf16.msrb.mxu0 %v3003_v46  ;;  %v1775_v7 = vpop.f32.mrf.mxu2 }
  0xbb   :  { %2014 = vmatpush.bf16.msrb.mxu1 %v3011_v47  ;;  %v1788_v9 = vpop.f32.mrf.mxu3 }
  0xbc   :  { %2027 = vmatpush.bf16.msrb.mxu2 %v3019_v50 }
  0xbd   :  { %2040 = vmatpush.bf16.msrb.mxu3 %v3027_v51 }
  0xbe   :  { %2002 = vmatpush.bf16.msrb.mxu0 %v3002_v53 }
  0xbf   :  { %2015 = vmatpush.bf16.msrb.mxu1 %v3010_v54 }
  0xc0   :  { %2028 = vmatpush.bf16.msrb.mxu2 %v3018_v55 }
  0xc1   :  { %2041 = vmatpush.bf16.msrb.mxu3 %v3026_v56 }
  0xc2   :  { %2003 = vmatpush.bf16.msrb.mxu0 %v3001_v61 }
  0xc3   :  { %2016 = vmatpush.bf16.msrb.mxu1 %v3009_v62 }
  0xc4   :  { %2029 = vmatpush.bf16.msrb.mxu2 %v3017_v1 }
  0xc5   :  { %2042 = vmatpush.bf16.msrb.mxu3 %v3025_v2 }
  0xc6   :  { %2004 = vmatpush.bf16.msrb.mxu0 %v3000_v3 }
  0xc7   :  { %2017 = vmatpush.bf16.msrb.mxu1 %v3008_v4 }
  0xc8   :  { %2030 = vmatpush.bf16.msrb.mxu2 %v3016_v5 }
  0xc9   :  { %2043 = vmatpush.bf16.msrb.mxu3 %v3024_v6 }
  0xca   :  { %2005 = vmatpush.bf16.msrb.mxu0 %v2999_v8  ;;  %v1799_v21 = vpop.f32.mrf.mxu0 }
  0xcb   :  { %2018 = vmatpush.bf16.msrb.mxu1 %v3007_v10  ;;  %v1800_v22 = vadd.f32 %v1799_v21, %v1787_v63  ;;  %v1812_v23 = vpop.f32.mrf.mxu1 }
  0xcc   :  { %2031 = vmatpush.bf16.msrb.mxu2 %v3015_v11 }
  0xcd   :  { %2044 = vmatpush.bf16.msrb.mxu3 %v3023_v12  ;;  %2006 = vmatmul.bf16.vlgmr.msrb.gmra.mxu0 %v194_v17  ;;  %v1813_v24 = vadd.f32 %v1812_v23, %v1800_v22 }
  0xce   :  { %2019 = vmatmul.bf16.vlgmr.msrb.gmra.mxu1 %v195_v18 }
  0xcf   :  { %2032 = vmatmul.bf16.vlgmr.msrb.gmra.mxu2 %v196_v19 }
  0xd0   :  { %2045 = vmatmul.bf16.vlgmr.msrb.gmra.mxu3 %v197_v20 }
  0xd2   :  { %v1825_v25 = vpop.f32.mrf.mxu2  ;;  %v1801_v28 = vpop.f32.mrf.mxu0 }
  0xd3   :  { %v1826_v26 = vadd.f32 %v1825_v25, %v1813_v24  ;;  %v1838_v27 = vpop.f32.mrf.mxu3  ;;  %v1814_v30 = vpop.f32.mrf.mxu1 }
  0xd5   :  { %v1839_v29 = vadd.f32 %v1838_v27, %v1826_v26 }
  0xda   :  { %v1827_v31 = vpop.f32.mrf.mxu2 }
  0xdb   :  { %v1840_v32 = vpop.f32.mrf.mxu3 }
  0xea   :  { %v1851_v33 = vpop.f32.mrf.mxu0 }
  0xeb   :  { %v1852_v34 = vadd.f32 %v1851_v33, %v1839_v29  ;;  %v1864_v35 = vpop.f32.mrf.mxu1 }
  0xed   :  { %v1865_v36 = vadd.f32 %v1864_v35, %v1852_v34 }
  0xf2   :  { %v1877_v37 = vpop.f32.mrf.mxu2  ;;  %v1853_v40 = vpop.f32.mrf.mxu0 }
  0xf3   :  { %v1878_v38 = vadd.f32 %v1877_v37, %v1865_v36  ;;  %v1890_v39 = vpop.f32.mrf.mxu3  ;;  %v1866_v42 = vpop.f32.mrf.mxu1 }
  0xf5   :  { %v1891_v41 = vadd.f32 %v1890_v39, %v1878_v38 }
  0xfa   :  { %v1879_v43 = vpop.f32.mrf.mxu2 }
  0xfb   :  { %v1892_v44 = vpop.f32.mrf.mxu3 }
 0x10a   :  { %v1903_v45 = vpop.f32.mrf.mxu0 }
 0x10b   :  { %v1916_v46 = vpop.f32.mrf.mxu1  ;;  %v1904_v56 = vadd.f32 %v1903_v45, %v1891_v41 }
 0x10d   :  { %v1917_v60 = vadd.f32 %v1916_v46, %v1904_v56 }
 0x112   :  { %v1929_v47 = vpop.f32.mrf.mxu2  ;;  %v1905_v49 = vpop.f32.mrf.mxu0 }
 0x113   :  { %v1942_v48 = vpop.f32.mrf.mxu3  ;;  %v1918_v50 = vpop.f32.mrf.mxu1  ;;  %v1930_v61 = vadd.f32 %v1929_v47, %v1917_v60 }
 0x115   :  { %v1943_v0 = vadd.f32 %v1942_v48, %v1930_v61 }
 0x11a   :  { %v1931_v51 = vpop.f32.mrf.mxu2 }
 0x11b   :  { %v1944_v52 = vpop.f32.mrf.mxu3 }
 0x12a   :  { %v1955_v53 = vpop.f32.mrf.mxu0 }
 0x12b   :  { %v1968_v54 = vpop.f32.mrf.mxu1  ;;  %v1956_v1 = vadd.f32 %v1955_v53, %v1943_v0 }
 0x12d   :  { %v1969_v2 = vadd.f32 %v1968_v54, %v1956_v1 }
 0x132   :  { %v1981_v55 = vpop.f32.mrf.mxu2  ;;  %v1957_v58 = vpop.f32.mrf.mxu0 }
 0x133   :  { %v1994_v57 = vpop.f32.mrf.mxu3  ;;  %v1970_v59 = vpop.f32.mrf.mxu1  ;;  %v1982_v3 = vadd.f32 %v1981_v55, %v1969_v2 }
 0x135   :  { %v1995_v4 = vadd.f32 %v1994_v57, %v1982_v3 }
 0x13a   :  { %v1983_v62 = vpop.f32.mrf.mxu2 }
 0x13b   :  { %v1996_v63 = vpop.f32.mrf.mxu3 }
 0x14a   :  { %v2007_v5 = vpop.f32.mrf.mxu0 }
 0x14b   :  { %v2020_v6 = vpop.f32.mrf.mxu1  ;;  %v2008_v7 = vadd.f32 %v2007_v5, %v1995_v4 }
 0x14d   :  { %v2021_v8 = vadd.f32 %v2020_v6, %v2008_v7 }
 0x152   :  { %v2033_v9 = vpop.f32.mrf.mxu2  ;;  %v2009_v12 = vpop.f32.mrf.mxu0 }
 0x153   :  { %v2046_v10 = vpop.f32.mrf.mxu3  ;;  %v2034_v11 = vadd.f32 %v2033_v9, %v2021_v8  ;;  %v2022_v13 = vpop.f32.mrf.mxu1 }
 0x155   :  { %v2047_v14 = vadd.f32 %v2046_v10, %v2034_v11 }
 0x157   :  { %2050 = vst [vmem:[#allocation7] sm:$0xff] %v2047_v14 }
 0x15a   :  { %v2035_v15 = vpop.f32.mrf.mxu2 }
 0x15b   :  { %v2048_v16 = vpop.f32.mrf.mxu3 }
 0x15c   :  { %2054 = vsyncadd [#allocation4], 96  ;;  %s2057_s27 = sshll.u32 %s3163_s3, 4  ;;  %s3125_s28 = smov [#allocation7]   ;;  %s2058_s27 = int_to_ptr.hbm [resolvable:$true] %s2057_s27 }
 0x15d   :  { %s2055_s29 = sshll.u32 %s3125_s28, 4  ;;  %s3126_s30 = smov 32   ;;  %s2056_s29 = int_to_ptr.vmem [resolvable:$true] %s2055_s29 }
 0x15e   :  { %s3127_s4 = smov 2  }
 0x15f   :  { %2063 = dma.vmem_to_hbm [thread:$0]  %s2056_s29, 32, %s2058_s27, [#allocation4], %s3126_s30, %s3126_s30, %s3127_s4  }
 0x160   :  { %3117 = dma.done.wait [#allocation4], 128  }
 0x161   :  { %3118 = vsyncadd [#allocation4], 4294967168 }
 0x162   :  { %2068 = vsyncpa [#allocation3], 1 }
 0x163   :  { %2069 = vsyncpa [#allocation6], 1 }
 0x164   :  { %2070 = vsyncpa [#allocation4], 1 }

</bundles_post_ra>
